<compile_context>
chip_gen: v5e
topology: v5e:2x2
jax: 0.10.0
libtpu: 0.0.40
codegen_flags: <defaults>
</compile_context>

<pallas_src>
import jax
import jax.numpy as jnp
from jax.experimental import pallas as pl
from jax.experimental.pallas import tpu as pltpu


# ----------------------------------------------------------------------------
# Pallas kernel: one grid step = one attention branch x one batch block.
# ----------------------------------------------------------------------------
def _osme_mamc_kernel(x_ref,      # (Bt, C, HW)   compute dtype (bf16/f32)
                      w1_ref,     # (1, C, C)     conv1 weight^T, BN folded
                      b1_ref,     # (1, C, 1)     conv1 bias, BN folded (f32)
                      w2_ref,     # (1, 1, C)     conv2 weight^T
                      b2_ref,     # (1, 1, 1)     conv2 bias (f32)
                      wfc_ref,    # (1, C, FC)    per-branch Linear weight
                      bfc_ref,    # (1, 1, FC)    per-branch Linear bias (f32)
                      wcls_ref,   # (1, FC, NCLS) classifier slice of branch
                      bcls_ref,   # (1, NCLS)     classifier bias (f32)
                      logits_ref, # (Bt, NCLS)    f32 output (accum over A)
                      fc_ref,     # (1, Bt, FC)   f32 output
                      att_ref):   # (1, Bt, HW)   f32 output
    a_idx = pl.program_id(1)
    bt, _, hw = x_ref.shape
    inv_hw = 1.0 / hw

    w1 = w1_ref[0]                                  # (C, C)
    b1 = b1_ref[0]                                  # (C, 1)
    w2 = w2_ref[0]                                  # (1, C)
    b2 = b2_ref[0]                                  # (1, 1)

    pooled_rows = []
    # Small static batch block; attention / pooling are per-sample matmuls.
    for b in range(bt):
        xb = x_ref[b]                               # (C, HW), lane-dense
        # 1x1 conv (+ folded BatchNorm) + ReLU
        h = jnp.dot(w1, xb, preferred_element_type=jnp.float32) + b1
        h = jnp.maximum(h, 0.0).astype(xb.dtype)    # (C, HW)
        # 1x1 conv (C -> 1) + sigmoid; lane-dense (1, HW) output
        a_logit = jnp.dot(w2, h, preferred_element_type=jnp.float32) + b2
        a_map = jax.nn.sigmoid(a_logit)             # (1, HW), f32
        # Store the attention map row directly (no big in-kernel concat).
        att_ref[0, pl.ds(b, 1), :] = a_map
        # Fused attend + global average pool: one MXU contraction over HW.
        pooled = jax.lax.dot_general(
            a_map.astype(xb.dtype), xb,
            (((1,), (1,)), ((), ())),               # contract HW of both
            preferred_element_type=jnp.float32) * inv_hw     # (1, C)
        pooled_rows.append(pooled)

    pooled_all = jnp.concatenate(pooled_rows, axis=0)        # (Bt, C), small

    # Per-branch FC (M = Bt rows in one matmul).
    fc = jnp.dot(pooled_all.astype(wfc_ref.dtype), wfc_ref[0],
                 preferred_element_type=jnp.float32) + bfc_ref[0]   # (Bt, FC)
    fc_ref[0] = fc

    # Classifier over concatenated features == sum of per-branch matmuls,
    # accumulated directly in the output block (resident across the A axis).
    @pl.when(a_idx == 0)
    def _init():
        logits_ref[...] = jnp.broadcast_to(bcls_ref[...], logits_ref.shape)

    logits_ref[...] += jnp.dot(fc.astype(wcls_ref.dtype), wcls_ref[0],
                               preferred_element_type=jnp.float32)


# ----------------------------------------------------------------------------
# Wrapper
# ----------------------------------------------------------------------------
def _pick_batch_block(batch):
    """Batch-block size: all of B for small B, else a multiple-of-8 divisor."""
    if batch <= 32:
        return batch
    for bt in (32, 24, 16, 8):
        if batch % bt == 0:
            return bt
    # TODO(synk): pad awkward batch sizes instead of using one large block.
    return batch


def osme_mamc_forward(x_nchw, params, *, compute_dtype=jnp.bfloat16):
    """x_nchw: (B, C, H, W) float32.  Returns (logits, attention_outputs, attention_maps)."""
    B, C, H, W = x_nchw.shape
    HW = H * W
    A, _, FC = params["wfc"].shape
    NCLS = params["wcls"].shape[-1]

    # NCHW -> (B, C, HW): pure reshape, channels on sublanes, HW on lanes.
    x = x_nchw.reshape(B, C, HW).astype(compute_dtype)

    # Fold eval-mode BatchNorm into the first 1x1 conv; transpose weights to
    # the (C_out, C_in) orientation used by the (C, HW) in-kernel layout.
    bn_s = params["bn_scale"].astype(jnp.float32)                     # (A, C)
    bn_b = params["bn_bias"].astype(jnp.float32)                      # (A, C)
    w1_t = jnp.swapaxes(params["w1"], 1, 2)                           # (A, Cout, Cin)
    w1f = (w1_t * bn_s[:, :, None]).astype(compute_dtype)             # (A, C, C)
    b1f = (params["b1"] * bn_s + bn_b)[:, :, None].astype(jnp.float32)  # (A, C, 1)
    w2t = jnp.swapaxes(params["w2"], 1, 2).astype(compute_dtype)      # (A, 1, C)
    b2p = params["b2"][:, :, None].astype(jnp.float32)                # (A, 1, 1)
    wfc = params["wfc"].astype(compute_dtype)                         # (A, C, FC)
    bfc = params["bfc"][:, None, :].astype(jnp.float32)               # (A, 1, FC)
    wcls = params["wcls"].astype(compute_dtype)                       # (A, FC, NCLS)
    bcls = params["bcls"].astype(jnp.float32)                         # (1, NCLS)

    Bt = _pick_batch_block(B)
    nb = B // Bt
    grid = (nb, A)

    def branch(shape):
        return pl.BlockSpec(shape, lambda b, a: (a,) + (0,) * (len(shape) - 1))

    in_specs = [
        pl.BlockSpec((Bt, C, HW), lambda b, a: (b, 0, 0)),  # x resident across A
        branch((1, C, C)),        # w1 (BN folded)
        branch((1, C, 1)),        # b1 (BN folded)
        branch((1, 1, C)),        # w2
        branch((1, 1, 1)),        # b2
        branch((1, C, FC)),       # wfc
        branch((1, 1, FC)),       # bfc
        branch((1, FC, NCLS)),    # wcls
        pl.BlockSpec((1, NCLS), lambda b, a: (0, 0)),       # bcls
    ]
    out_specs = (
        pl.BlockSpec((Bt, NCLS), lambda b, a: (b, 0)),      # logits (acc over A)
        pl.BlockSpec((1, Bt, FC), lambda b, a: (a, b, 0)),  # per-branch fc
        pl.BlockSpec((1, Bt, HW), lambda b, a: (a, b, 0)),  # attention maps
    )
    out_shape = (
        jax.ShapeDtypeStruct((B, NCLS), jnp.float32),
        jax.ShapeDtypeStruct((A, B, FC), jnp.float32),
        jax.ShapeDtypeStruct((A, B, HW), jnp.float32),
    )

    logits, fc_all, att_all = pl.pallas_call(
        _osme_mamc_kernel,
        grid=grid,
        in_specs=in_specs,
        out_specs=out_specs,
        out_shape=out_shape,
        compiler_params=pltpu.CompilerParams(
            dimension_semantics=("parallel", "arbitrary")),
    )(x, w1f, b1f, w2t, b2p, wfc, bfc, wcls, bcls)

    attention_outputs = [fc_all[i] for i in range(A)]
    attention_maps = [att_all[i].reshape(B, 1, H, W) for i in range(A)]
    return logits, attention_outputs, attention_maps


# ----------------------------------------------------------------------------
# Deterministic parameter construction (synthetic, matches module shapes)
# ----------------------------------------------------------------------------
def make_params(key, in_channels, attention_num=2, fc_dim=512, n_classes=2):
    C, A = in_channels, attention_num
    ks = jax.random.split(key, 12)
    norm = lambda k, shp, s=0.05: (s * jax.random.normal(k, shp)).astype(jnp.float32)

    w1 = norm(ks[0], (A, C, C))                 # (C_in, C_out) convention
    b1 = norm(ks[1], (A, C))
    # BatchNorm2d params (eval mode), folded into scale/bias
    gamma = 1.0 + norm(ks[2], (A, C), 0.1)
    beta = norm(ks[3], (A, C), 0.1)
    run_mean = norm(ks[4], (A, C), 0.1)
    run_var = 1.0 + jnp.abs(norm(ks[5], (A, C), 0.1))
    eps = 1e-5
    bn_scale = gamma / jnp.sqrt(run_var + eps)
    bn_bias = beta - run_mean * bn_scale

    w2 = norm(ks[6], (A, C, 1))
    b2 = norm(ks[7], (A, 1))
    wfc = norm(ks[8], (A, C, fc_dim))
    bfc = norm(ks[9], (A, fc_dim))
    wcls = norm(ks[10], (A, fc_dim, n_classes))  # classifier weight split per branch
    bcls = norm(ks[11], (1, n_classes))

    return dict(w1=w1, b1=b1, bn_scale=bn_scale.astype(jnp.float32),
                bn_bias=bn_bias.astype(jnp.float32), w2=w2, b2=b2,
                wfc=wfc, bfc=bfc, wcls=wcls, bcls=bcls)


# ----------------------------------------------------------------------------
# Pure-JAX reference (for a sanity check)
# ----------------------------------------------------------------------------
def reference_forward(x_nchw, params):
    B, C, H, W = x_nchw.shape
    x = jnp.transpose(x_nchw.reshape(B, C, H * W), (0, 2, 1))   # (B, HW, C)
    A = params["w1"].shape[0]
    fc_outs, att_maps = [], []
    acc = params["bcls"]
    for i in range(A):
        h = x @ params["w1"][i] + params["b1"][i]
        h = h * params["bn_scale"][i] + params["bn_bias"][i]
        h = jnp.maximum(h, 0.0)
        am = jax.nn.sigmoid(h @ params["w2"][i] + params["b2"][i])   # (B, HW, 1)
        att_maps.append(jnp.transpose(am, (0, 2, 1)).reshape(B, 1, H, W))
        pooled = jnp.mean(x * am, axis=1)                            # (B, C)
        fc = pooled @ params["wfc"][i] + params["bfc"][i]            # (B, 512)
        fc_outs.append(fc)
        acc = acc + fc @ params["wcls"][i]
    return acc, fc_outs, att_maps


# ----------------------------------------------------------------------------
if __name__ == "__main__":
    B, C, H, W = 2, 4, 16, 16
    A = 2

    key = jax.random.PRNGKey(0)
    kx, kp = jax.random.split(key)
    x = jax.random.normal(kx, (B, C, H, W), dtype=jnp.float32)
    params = make_params(kp, in_channels=C, attention_num=A)

    out, fc_list, att_list = osme_mamc_forward(x, params)
    out = jax.block_until_ready(out)

    ref_out, ref_fc, ref_att = reference_forward(x, params)
    assert out.shape == (B, 2)
    assert all(f.shape == (B, 512) for f in fc_list)
    assert all(a.shape == (B, 1, H, W) for a in att_list)
    # bf16 inputs/weights with f32 accumulation -> slightly looser tolerance.
    tol = dict(atol=5e-3, rtol=5e-3)
    assert jnp.allclose(out, ref_out, **tol)
    for a, b in zip(fc_list, ref_fc):
        assert jnp.allclose(a, b, **tol)
    for a, b in zip(att_list, ref_att):
        assert jnp.allclose(a, b, **tol)

    print("KERNEL_OK")
</pallas_src>

<mosaic_0001>
module attributes {stable_mosaic.version = 11 : i64} {
  func.func @_osme_mamc_kernel(%arg0: i32, %arg1: i32, %arg2: memref<2x4x256xbf16, #tpu.memory_space<vmem>>, %arg3: memref<1x4x4xbf16, #tpu.memory_space<vmem>>, %arg4: memref<1x4x1xf32, #tpu.memory_space<vmem>>, %arg5: memref<1x1x4xbf16, #tpu.memory_space<vmem>>, %arg6: memref<1x1x1xf32, #tpu.memory_space<vmem>>, %arg7: memref<1x4x512xbf16, #tpu.memory_space<vmem>>, %arg8: memref<1x1x512xf32, #tpu.memory_space<vmem>>, %arg9: memref<1x512x2xbf16, #tpu.memory_space<vmem>>, %arg10: memref<1x2xf32, #tpu.memory_space<vmem>>, %arg11: memref<2x2xf32, #tpu.memory_space<vmem>>, %arg12: memref<1x2x512xf32, #tpu.memory_space<vmem>>, %arg13: memref<1x2x256xf32, #tpu.memory_space<vmem>>) attributes {dimension_semantics = [#tpu.dimension_semantics<parallel>, #tpu.dimension_semantics<arbitrary>], iteration_bounds = array<i64: 1, 2>, scalar_prefetch = 0 : i64, scratch_operands = 0 : i64, tpu.core_type = #tpu.core_type<tc>, window_params = [{transform_indices = @transform_0, window_bounds = array<i64: 2, 4, 256>}, {transform_indices = @transform_1, window_bounds = array<i64: 1, 4, 4>}, {transform_indices = @transform_2, window_bounds = array<i64: 1, 4, 1>}, {transform_indices = @transform_3, window_bounds = array<i64: 1, 1, 4>}, {transform_indices = @transform_4, window_bounds = array<i64: 1, 1, 1>}, {transform_indices = @transform_5, window_bounds = array<i64: 1, 4, 512>}, {transform_indices = @transform_6, window_bounds = array<i64: 1, 1, 512>}, {transform_indices = @transform_7, window_bounds = array<i64: 1, 512, 2>}, {pipeline_mode = #tpu.pipeline_mode<synchronous>, transform_indices = @transform_8, window_bounds = array<i64: 1, 2>}, {transform_indices = @transform_9, window_bounds = array<i64: 2, 2>}, {transform_indices = @transform_10, window_bounds = array<i64: 1, 2, 512>}, {transform_indices = @transform_11, window_bounds = array<i64: 1, 2, 256>}]} {
    %c0 = arith.constant 0 : index
    %c0_0 = arith.constant 0 : index
    %c0_1 = arith.constant 0 : index
    %0 = vector.load %arg3[%c0, %c0_0, %c0_1] : memref<1x4x4xbf16, #tpu.memory_space<vmem>>, vector<1x4x4xbf16>
    %1 = vector.shape_cast %0 : vector<1x4x4xbf16> to vector<4x4xbf16>
    %c0_2 = arith.constant 0 : index
    %c0_3 = arith.constant 0 : index
    %c0_4 = arith.constant 0 : index
    %2 = vector.load %arg4[%c0_2, %c0_3, %c0_4] : memref<1x4x1xf32, #tpu.memory_space<vmem>>, vector<1x4x1xf32>
    %3 = vector.shape_cast %2 : vector<1x4x1xf32> to vector<4x1xf32>
    %c0_5 = arith.constant 0 : index
    %c0_6 = arith.constant 0 : index
    %c0_7 = arith.constant 0 : index
    %4 = vector.load %arg5[%c0_5, %c0_6, %c0_7] : memref<1x1x4xbf16, #tpu.memory_space<vmem>>, vector<1x1x4xbf16>
    %5 = vector.shape_cast %4 : vector<1x1x4xbf16> to vector<1x4xbf16>
    %c0_8 = arith.constant 0 : index
    %c0_9 = arith.constant 0 : index
    %c0_10 = arith.constant 0 : index
    %6 = vector.load %arg6[%c0_8, %c0_9, %c0_10] : memref<1x1x1xf32, #tpu.memory_space<vmem>>, vector<1x1x1xf32>
    %7 = vector.shape_cast %6 : vector<1x1x1xf32> to vector<1x1xf32>
    %c0_11 = arith.constant 0 : index
    %c0_12 = arith.constant 0 : index
    %c0_13 = arith.constant 0 : index
    %8 = vector.load %arg2[%c0_11, %c0_12, %c0_13] : memref<2x4x256xbf16, #tpu.memory_space<vmem>>, vector<1x4x256xbf16>
    %9 = vector.shape_cast %8 : vector<1x4x256xbf16> to vector<4x256xbf16>
    %cst = arith.constant dense<0.000000e+00> : vector<4x256xf32>
    %10 = tpu.matmul %1, %9, %cst {dimension_numbers = #tpu.dot_dimension_numbers<[1], [0], [0], [1], [0, 0, 1, 1], [], []>} : vector<4x4xbf16>, vector<4x256xbf16>, vector<4x256xf32> -> vector<4x256xf32>
    %11 = vector.broadcast %3 : vector<4x1xf32> to vector<4x256xf32>
    %12 = arith.addf %10, %11 : vector<4x256xf32>
    %cst_14 = arith.constant 0.000000e+00 : f32
    %13 = vector.broadcast %cst_14 : f32 to vector<4x256xf32>
    %14 = arith.maximumf %12, %13 : vector<4x256xf32>
    %15 = arith.truncf %14 : vector<4x256xf32> to vector<4x256xbf16>
    %cst_15 = arith.constant dense<0.000000e+00> : vector<1x256xf32>
    %16 = tpu.matmul %5, %15, %cst_15 {dimension_numbers = #tpu.dot_dimension_numbers<[1], [0], [0], [1], [0, 0, 1, 1], [], []>} : vector<1x4xbf16>, vector<4x256xbf16>, vector<1x256xf32> -> vector<1x256xf32>
    %17 = vector.broadcast %7 : vector<1x1xf32> to vector<1x256xf32>
    %18 = arith.addf %16, %17 : vector<1x256xf32>
    %19 = arith.negf %18 : vector<1x256xf32>
    %20 = math.exp %19 : vector<1x256xf32>
    %cst_16 = arith.constant 1.000000e+00 : f32
    %21 = vector.broadcast %cst_16 : f32 to vector<1x256xf32>
    %22 = arith.addf %21, %20 : vector<1x256xf32>
    %23 = arith.divf %21, %22 : vector<1x256xf32>
    %c0_17 = arith.constant 0 : index
    %c0_18 = arith.constant 0 : index
    %c0_19 = arith.constant 0 : index
    %24 = vector.load %arg13[%c0_17, %c0_18, %c0_19] : memref<1x2x256xf32, #tpu.memory_space<vmem>>, vector<1x1x256xf32>
    %25 = vector.shape_cast %24 : vector<1x1x256xf32> to vector<1x256xf32>
    %26 = vector.shape_cast %23 : vector<1x256xf32> to vector<1x1x256xf32>
    tpu.vector_store %arg13[%c0_17, %c0_18, %c0_19], %26 {strides = array<i32>} : memref<1x2x256xf32, #tpu.memory_space<vmem>>, vector<1x1x256xf32>,
    %27 = arith.truncf %23 : vector<1x256xf32> to vector<1x256xbf16>
    %cst_20 = arith.constant dense<0.000000e+00> : vector<1x4xf32>
    %28 = tpu.matmul %27, %9, %cst_20 {dimension_numbers = #tpu.dot_dimension_numbers<[1], [1], [0], [0], [0, 0, 1, 0], [], []>} : vector<1x256xbf16>, vector<4x256xbf16>, vector<1x4xf32> -> vector<1x4xf32>
    %cst_21 = arith.constant 3.906250e-03 : f32
    %29 = vector.broadcast %cst_21 : f32 to vector<1x4xf32>
    %30 = arith.mulf %28, %29 : vector<1x4xf32>
    %c1 = arith.constant 1 : index
    %c0_22 = arith.constant 0 : index
    %c0_23 = arith.constant 0 : index
    %31 = vector.load %arg2[%c1, %c0_22, %c0_23] : memref<2x4x256xbf16, #tpu.memory_space<vmem>>, vector<1x4x256xbf16>
    %32 = vector.shape_cast %31 : vector<1x4x256xbf16> to vector<4x256xbf16>
    %cst_24 = arith.constant dense<0.000000e+00> : vector<4x256xf32>
    %33 = tpu.matmul %1, %32, %cst_24 {dimension_numbers = #tpu.dot_dimension_numbers<[1], [0], [0], [1], [0, 0, 1, 1], [], []>} : vector<4x4xbf16>, vector<4x256xbf16>, vector<4x256xf32> -> vector<4x256xf32>
    %34 = vector.broadcast %3 : vector<4x1xf32> to vector<4x256xf32>
    %35 = arith.addf %33, %34 : vector<4x256xf32>
    %cst_25 = arith.constant 0.000000e+00 : f32
    %36 = vector.broadcast %cst_25 : f32 to vector<4x256xf32>
    %37 = arith.maximumf %35, %36 : vector<4x256xf32>
    %38 = arith.truncf %37 : vector<4x256xf32> to vector<4x256xbf16>
    %cst_26 = arith.constant dense<0.000000e+00> : vector<1x256xf32>
    %39 = tpu.matmul %5, %38, %cst_26 {dimension_numbers = #tpu.dot_dimension_numbers<[1], [0], [0], [1], [0, 0, 1, 1], [], []>} : vector<1x4xbf16>, vector<4x256xbf16>, vector<1x256xf32> -> vector<1x256xf32>
    %40 = vector.broadcast %7 : vector<1x1xf32> to vector<1x256xf32>
    %41 = arith.addf %39, %40 : vector<1x256xf32>
    %42 = arith.negf %41 : vector<1x256xf32>
    %43 = math.exp %42 : vector<1x256xf32>
    %cst_27 = arith.constant 1.000000e+00 : f32
    %44 = vector.broadcast %cst_27 : f32 to vector<1x256xf32>
    %45 = arith.addf %44, %43 : vector<1x256xf32>
    %46 = arith.divf %44, %45 : vector<1x256xf32>
    %c0_28 = arith.constant 0 : index
    %c1_29 = arith.constant 1 : index
    %c0_30 = arith.constant 0 : index
    %47 = vector.load %arg13[%c0_28, %c1_29, %c0_30] : memref<1x2x256xf32, #tpu.memory_space<vmem>>, vector<1x1x256xf32>
    %48 = vector.shape_cast %47 : vector<1x1x256xf32> to vector<1x256xf32>
    %49 = vector.shape_cast %46 : vector<1x256xf32> to vector<1x1x256xf32>
    tpu.vector_store %arg13[%c0_28, %c1_29, %c0_30], %49 {strides = array<i32>} : memref<1x2x256xf32, #tpu.memory_space<vmem>>, vector<1x1x256xf32>,
    %50 = arith.truncf %46 : vector<1x256xf32> to vector<1x256xbf16>
    %cst_31 = arith.constant dense<0.000000e+00> : vector<1x4xf32>
    %51 = tpu.matmul %50, %32, %cst_31 {dimension_numbers = #tpu.dot_dimension_numbers<[1], [1], [0], [0], [0, 0, 1, 0], [], []>} : vector<1x256xbf16>, vector<4x256xbf16>, vector<1x4xf32> -> vector<1x4xf32>
    %cst_32 = arith.constant 3.906250e-03 : f32
    %52 = vector.broadcast %cst_32 : f32 to vector<1x4xf32>
    %53 = arith.mulf %51, %52 : vector<1x4xf32>
    %54 = tpu.concatenate %30, %53 in 0 : vector<1x4xf32>, vector<1x4xf32> -> vector<2x4xf32>
    %55 = arith.truncf %54 : vector<2x4xf32> to vector<2x4xbf16>
    %c0_33 = arith.constant 0 : index
    %c0_34 = arith.constant 0 : index
    %c0_35 = arith.constant 0 : index
    %56 = vector.load %arg7[%c0_33, %c0_34, %c0_35] : memref<1x4x512xbf16, #tpu.memory_space<vmem>>, vector<1x4x512xbf16>
    %57 = vector.shape_cast %56 : vector<1x4x512xbf16> to vector<4x512xbf16>
    %cst_36 = arith.constant dense<0.000000e+00> : vector<2x512xf32>
    %58 = tpu.matmul %55, %57, %cst_36 {dimension_numbers = #tpu.dot_dimension_numbers<[1], [0], [0], [1], [0, 0, 1, 1], [], []>} : vector<2x4xbf16>, vector<4x512xbf16>, vector<2x512xf32> -> vector<2x512xf32>
    %c0_37 = arith.constant 0 : index
    %c0_38 = arith.constant 0 : index
    %c0_39 = arith.constant 0 : index
    %59 = vector.load %arg8[%c0_37, %c0_38, %c0_39] : memref<1x1x512xf32, #tpu.memory_space<vmem>>, vector<1x1x512xf32>
    %60 = vector.shape_cast %59 : vector<1x1x512xf32> to vector<1x512xf32>
    %61 = vector.broadcast %60 : vector<1x512xf32> to vector<2x512xf32>
    %62 = arith.addf %58, %61 : vector<2x512xf32>
    %c0_40 = arith.constant 0 : index
    %c0_41 = arith.constant 0 : index
    %c0_42 = arith.constant 0 : index
    %63 = vector.load %arg12[%c0_40, %c0_41, %c0_42] : memref<1x2x512xf32, #tpu.memory_space<vmem>>, vector<1x2x512xf32>
    %64 = vector.shape_cast %63 : vector<1x2x512xf32> to vector<2x512xf32>
    %65 = vector.shape_cast %62 : vector<2x512xf32> to vector<1x2x512xf32>
    tpu.vector_store %arg12[%c0_40, %c0_41, %c0_42], %65 {strides = array<i32>} : memref<1x2x512xf32, #tpu.memory_space<vmem>>, vector<1x2x512xf32>,
    %c0_i32 = arith.constant 0 : i32
    %66 = arith.cmpi eq, %arg1, %c0_i32 : i32
    %67 = arith.extui %66 : i1 to i32
    %c0_i32_43 = arith.constant 0 : i32
    %68 = arith.cmpi ne, %67, %c0_i32_43 : i32
    scf.if %68 {
      %c0_52 = arith.constant 0 : index
      %c0_53 = arith.constant 0 : index
      %76 = vector.load %arg10[%c0_52, %c0_53] : memref<1x2xf32, #tpu.memory_space<vmem>>, vector<1x2xf32>
      %77 = vector.shape_cast %76 : vector<1x2xf32> to vector<1x2xf32>
      %78 = vector.broadcast %77 : vector<1x2xf32> to vector<2x2xf32>
      %c0_54 = arith.constant 0 : index
      %c0_55 = arith.constant 0 : index
      %79 = vector.load %arg11[%c0_54, %c0_55] : memref<2x2xf32, #tpu.memory_space<vmem>>, vector<2x2xf32>
      tpu.vector_store %arg11[%c0_54, %c0_55], %78 {strides = array<i32>} : memref<2x2xf32, #tpu.memory_space<vmem>>, vector<2x2xf32>,
    } else {
    }
    %c0_44 = arith.constant 0 : index
    %c0_45 = arith.constant 0 : index
    %69 = vector.load %arg11[%c0_44, %c0_45] : memref<2x2xf32, #tpu.memory_space<vmem>>, vector<2x2xf32>
    %70 = arith.truncf %62 : vector<2x512xf32> to vector<2x512xbf16>
    %c0_46 = arith.constant 0 : index
    %c0_47 = arith.constant 0 : index
    %c0_48 = arith.constant 0 : index
    %71 = vector.load %arg9[%c0_46, %c0_47, %c0_48] : memref<1x512x2xbf16, #tpu.memory_space<vmem>>, vector<1x512x2xbf16>
    %72 = vector.shape_cast %71 : vector<1x512x2xbf16> to vector<512x2xbf16>
    %cst_49 = arith.constant dense<0.000000e+00> : vector<2x2xf32>
    %73 = tpu.matmul %70, %72, %cst_49 {dimension_numbers = #tpu.dot_dimension_numbers<[1], [0], [0], [1], [0, 0, 1, 1], [], []>} : vector<2x512xbf16>, vector<512x2xbf16>, vector<2x2xf32> -> vector<2x2xf32>
    %74 = arith.addf %69, %73 : vector<2x2xf32>
    %c0_50 = arith.constant 0 : index
    %c0_51 = arith.constant 0 : index
    %75 = vector.load %arg11[%c0_50, %c0_51] : memref<2x2xf32, #tpu.memory_space<vmem>>, vector<2x2xf32>
    tpu.vector_store %arg11[%c0_50, %c0_51], %74 {strides = array<i32>} : memref<2x2xf32, #tpu.memory_space<vmem>>, vector<2x2xf32>,
    return
  }
  func.func @transform_0(%arg0: i32, %arg1: i32) -> (i32, i32, i32) {
    %c0_i32 = arith.constant 0 : i32
    %c0_i32_0 = arith.constant 0 : i32
    %c0_i32_1 = arith.constant 0 : i32
    return %arg0, %c0_i32, %c0_i32_0 : i32, i32, i32
  }
  func.func @transform_1(%arg0: i32, %arg1: i32) -> (i32, i32, i32) {
    %c0_i32 = arith.constant 0 : i32
    %c0_i32_0 = arith.constant 0 : i32
    %c0_i32_1 = arith.constant 0 : i32
    return %arg1, %c0_i32, %c0_i32_0 : i32, i32, i32
  }
  func.func @transform_2(%arg0: i32, %arg1: i32) -> (i32, i32, i32) {
    %c0_i32 = arith.constant 0 : i32
    %c0_i32_0 = arith.constant 0 : i32
    %c0_i32_1 = arith.constant 0 : i32
    return %arg1, %c0_i32, %c0_i32_0 : i32, i32, i32
  }
  func.func @transform_3(%arg0: i32, %arg1: i32) -> (i32, i32, i32) {
    %c0_i32 = arith.constant 0 : i32
    %c0_i32_0 = arith.constant 0 : i32
    %c0_i32_1 = arith.constant 0 : i32
    return %arg1, %c0_i32, %c0_i32_0 : i32, i32, i32
  }
  func.func @transform_4(%arg0: i32, %arg1: i32) -> (i32, i32, i32) {
    %c0_i32 = arith.constant 0 : i32
    %c0_i32_0 = arith.constant 0 : i32
    %c0_i32_1 = arith.constant 0 : i32
    return %arg1, %c0_i32, %c0_i32_0 : i32, i32, i32
  }
  func.func @transform_5(%arg0: i32, %arg1: i32) -> (i32, i32, i32) {
    %c0_i32 = arith.constant 0 : i32
    %c0_i32_0 = arith.constant 0 : i32
    %c0_i32_1 = arith.constant 0 : i32
    return %arg1, %c0_i32, %c0_i32_0 : i32, i32, i32
  }
  func.func @transform_6(%arg0: i32, %arg1: i32) -> (i32, i32, i32) {
    %c0_i32 = arith.constant 0 : i32
    %c0_i32_0 = arith.constant 0 : i32
    %c0_i32_1 = arith.constant 0 : i32
    return %arg1, %c0_i32, %c0_i32_0 : i32, i32, i32
  }
  func.func @transform_7(%arg0: i32, %arg1: i32) -> (i32, i32, i32) {
    %c0_i32 = arith.constant 0 : i32
    %c0_i32_0 = arith.constant 0 : i32
    %c0_i32_1 = arith.constant 0 : i32
    return %arg1, %c0_i32, %c0_i32_0 : i32, i32, i32
  }
  func.func @transform_8(%arg0: i32, %arg1: i32) -> (i32, i32) {
    %c0_i32 = arith.constant 0 : i32
    %c0_i32_0 = arith.constant 0 : i32
    %c0_i32_1 = arith.constant 0 : i32
    return %c0_i32, %c0_i32_0 : i32, i32
  }
  func.func @transform_9(%arg0: i32, %arg1: i32) -> (i32, i32) {
    %c0_i32 = arith.constant 0 : i32
    %c0_i32_0 = arith.constant 0 : i32
    return %arg0, %c0_i32 : i32, i32
  }
  func.func @transform_10(%arg0: i32, %arg1: i32) -> (i32, i32, i32) {
    %c0_i32 = arith.constant 0 : i32
    %c0_i32_0 = arith.constant 0 : i32
    return %arg1, %arg0, %c0_i32 : i32, i32, i32
  }
  func.func @transform_11(%arg0: i32, %arg1: i32) -> (i32, i32, i32) {
    %c0_i32 = arith.constant 0 : i32
    %c0_i32_0 = arith.constant 0 : i32
    return %arg1, %arg0, %c0_i32 : i32, i32, i32
  }
}

</mosaic_0001>

<bundles_post_ra>
// kernel: tpu_custom_call.1
= control target key start
LH: loop header
LB: loop body
LE: loop exit
PB: predicated region body
PF: predicated region fallthrough
CT: control target
= control target key end

     0   :  { %s2339_s0 = inlined_call_operand.vmem [shape: bf16[2,4,256], index: 0, kind: input, shape index: {}]   ;;  %s2340_s1 = inlined_call_operand.vmem [shape: bf16[2,4,4], index: 1, kind: input, shape index: {}]   ;;  %s2341_s2 = inlined_call_operand.vmem [shape: f32[2,4,1], index: 2, kind: input, shape index: {}]   ;;  %s2342_s3 = inlined_call_operand.vmem [shape: bf16[2,1,4], index: 3, kind: input, shape index: {}]   ;;  %s2343_s4 = inlined_call_operand.vmem [shape: f32[2,1,1], index: 4, kind: input, shape index: {}]   ;;  %s2344_s5 = inlined_call_operand.vmem [shape: bf16[2,4,512], index: 5, kind: input, shape index: {}]   ;;  %s2345_s6 = inlined_call_operand.vmem [shape: f32[2,1,512], index: 6, kind: input, shape index: {}]   ;;  %s2346_s7 = inlined_call_operand.vmem [shape: bf16[2,512,2], index: 7, kind: input, shape index: {}]   ;;  %s2347_s8 = inlined_call_operand.vmem [shape: f32[1,2], index: 8, kind: input, shape index: {}]   ;;  %s2348_s9 = inlined_call_operand.hbm [shape: f32[2,2], index: 9, kind: output, shape index: {0}]   ;;  %s2349_s10 = inlined_call_operand.hbm [shape: f32[2,2,512], index: 10, kind: output, shape index: {1}]   ;;  %s2350_s11 = inlined_call_operand.hbm [shape: f32[2,2,256], index: 11, kind: output, shape index: {2}]  }
   0x1   :  { %2356 = sst [smem:[#allocation13_spill]] %s2339_s0 }
   0x2   :  { %2357 = sst [smem:[#allocation14_spill]] %s2340_s1 }
   0x3   :  { %17 = vsyncpa [#allocation3], 0 }
   0x4   :  { %18 = vsyncpa [#allocation5], 0 }
   0x5   :  { %20 = vsyncpa [#allocation5 + $0x1], 0  ;;  %s2041_s17 = smov 0   ;;  %s2043_s18 = smov 0  }
   0x6   :  { %s2045_s19 = smov 0   ;;  %s2047_s20 = smov 0  }
   0x7   :  { %s2049_s21 = smov 0   ;;  %s2051_s22 = smov 0  }
   0x8 LB: > { %2358 = sst [smem:[#allocation9_spill]] %s1965_s19  ;;  %s2352_s23 = sadd.s32 4294967295, %s1977_s22   ;;  %s1977_s22 = sphi %s2051_s22, %s26_s22   ;;  %s1973_s21 = sphi %s2049_s21, %s2374_s21   ;;  %s1969_s20 = sphi %s2047_s20, %s2373_s20   ;;  %s1965_s19 = sphi %s2045_s19, %s2372_s19   ;;  %s1961_s18 = sphi %s2043_s18, %s2376_s18   ;;  %s1957_s17 = sphi %s2041_s17, %s2375_s17  }
   0x9   : > { %2359 = sst [smem:[#allocation10_spill]] %s1973_s21  ;;  %s2351_s24 = sadd.s32 4294967294, %s1977_s22  }
   0xa   : > { %s35_s25 = sadd.s32 1, %s1973_s21  ;;  %s302_s26 = sadd.s32 1, %s1965_s19 }
   0xb   : > { %p36_p0 = scmp.ge.s32.totalorder %s35_s25, 2  ;;  %p312_p1 = scmp.ne.s32.totalorder %s1965_s19, %s1961_s18 }
   0xc   : > { %p2077_p2 = scmp.eq.s32.totalorder %s2352_s23, 1  ;;  %p318_p3 = scmp.ne.s32.totalorder %s1961_s18, %s1957_s17 }
   0xd   : > { %s2378_s25 = smov (%p36_p0, %s35_s25), 0  ;;  %p319_p5 = scmp.eq.s32.totalorder %s2351_s24, 1 }
   0xe   : > { %2361 = sst [smem:[#allocation11_spill]] %s2378_s25  ;;  %p2086_p4 = por %p2077_p2, %p312_p1 }
   0xf   : > { %s297_s29 = ssub.s32 %s1973_s21, %s2378_s25  ;;  %p1550_p6 = scmp.ge.s32.totalorder %s1977_s22, 1 }
  0x10   : > { %p300_p7 = scmp.eq.s32.totalorder %s297_s29, 0  ;;  %p2095_p8 = por %p319_p5, %p318_p3 }
  0x11   : > { %p427_p9 = scmp.lt.s32.totalorder %s1977_s22, 3 }
  0x12   : > { %s2101_s12 = scalar_select %p300_p7, %s1965_s19, %s302_s26  }
  0x13   : > { %p428_p10 = pnand %p1550_p6, %p427_p9 }
  0x14   : > { %2364 = sst [smem:[#allocation12_spill]] %s2101_s12  ;;  %p508_p11 = scmp.lt.s32.totalorder (!%p428_p10), %s1969_s20, 1 }
  0x15   : > { %431 = sbr.rel (%p428_p10) target bundleno = 976 (0x3d0), region = 56  ;;  %s2365_s0 = sld [smem:[#allocation13_spill]] (!%p428_p10) }
  0x16   : > { %s2366_s1 = sld [smem:[#allocation14_spill]] (!%p428_p10)  ;;  %p1578_p12 = scmp.ne.s32.totalorder (!%p428_p10), %s1969_s20, 0 }
  0x1a   : > { %s2108_s15 = scalar_select %p508_p11, %s1969_s20, 1  ;;  %v1979_v1 = vmov 0   ;;  %vm555_vm0 = vcmask 1041408   ;;  %vm551_vm1 = vcmask 31744   ;;  %vm672_vm10 = vcmask 1040384  }
  0x1b   : > { %v541_v0 = vld [vmem:[%s2365_s0] sm:$0xf]  ;;  %1821 = vset.pattern.permute.xlu0 %v1979_v1  ;;  %v1566_v8 = vld [vmem:[%s2365_s0 + $0x4] sm:$0xf] }
  0x1c   : > { %548 = vst [vmem:[#allocation1] ss:$4 sm:$0xff] %v541_v0  ;;  %s1553_s16 = sshll.u32 %s2108_s15, 1  ;;  %s1718_s13 = sshll.u32 %s2108_s15, 8 }
  0x1d   : > { %s511_s29 = scalar_lea.vmem %s2366_s1, %s1553_s16  ;;  %s1554_s14 = sshll.u32 %s2108_s15, 2 }
  0x1e   : > { %s2119_s25 = scalar_lea.vmem %s2346_s7, %s1718_s13  ;;  %s515_s19 = scalar_lea.vmem %s2341_s2, %s1554_s14  ;;  %v537_v7 = vld [vmem:[%s511_s29] sm:$0x3] }
  0x1f   : > { %v538_v6 = vld [vmem:[%s515_s19] sm:$0xf]  ;;  %s521_s16 = scalar_lea.vmem %s2343_s4, %s2108_s15  ;;  %s518_s26 = scalar_lea.vmem %s2342_s3, %s2108_s15 }
  0x20   : > { %544 = vperm.xlu0 %1821, %v538_v6   ;;  %v540_v9 = vld [vmem:[%s521_s16] sm:$0x1]  ;;  %s491_s29 = sand.u32 1, %s1961_s18   ;;  %s1717_s24 = sshll.u32 %s2108_s15, 3 }
  0x21   : > { %v2145_v29 = vld [vmem:[%s518_s26] sm:$0x1]  ;;  %s1552_s13 = sshll.u32 %s491_s29, 2  ;;  %s526_s12 = scalar_lea.vmem %s2344_s5, %s1717_s24 }
  0x22   : > { %s2167_s23 = scalar_lea.vmem [#allocation6], %s1552_s13  ;;  %s530_s26 = scalar_lea.vmem %s2345_s6, %s1554_s14 }
  0x23   : > { %v549_v2 = vld.sshfl [vmem:[#allocation1] sm:$0xff pattern:$0x73625140]  ;;  %v550_v3 = vld.sshfl [vmem:[#allocation1 + $0x8] sm:$0xff pattern:$0x73625140] }
  0x24   : > { %v556_v4 = vsel %vm555_vm0, %v549_v2, 0  ;;  %v558_v5 = vsel %vm555_vm0, %v550_v3, 0  ;;  %682 = vst [vmem:[#allocation1] ss:$4 sm:$0xff] %v541_v0  ;;  %s2210_s15 = sshll.u32 %s491_s29, 3 }
  0x25   : > { %567 = vmatpush.bf16.msra.mxu0 %v556_v4  ;;  %580 = vmatpush.bf16.msra.mxu1 %v558_v5  ;;  %s493_s14 = scalar_lea.vmem [#allocation4], %s2210_s15 }
  0x28   : > { %1560 = vmatmul.msk.bf16.vlgmr.msra.gmra.mxu0 %vm551_vm1, %v537_v7  ;;  %1561 = vmatmul.msk.bf16.vlgmr.msra.gmra.mxu1 %vm551_vm1, %v537_v7 }
  0x29   : > { %592 = vperm.xlu0 %1821, %v540_v9  }
  0x2b   : > { %v683_v10 = vld.sshfl [vmem:[#allocation1] sm:$0xff pattern:$0x73625140]  ;;  %v684_v11 = vld.sshfl [vmem:[#allocation1 + $0x8] sm:$0xff pattern:$0x73625140] }
  0x2c   : > { %717 = vst [vmem:[#allocation1] ss:$4 sm:$0xff] %v1566_v8  ;;  %694 = vmatpush.bf16.xpose.msrb.mxu0 %v683_v10  ;;  %707 = vmatpush.bf16.xpose.msrb.mxu1 %v684_v11 }
  0x33   : > { %v718_v12 = vld.sshfl [vmem:[#allocation1] sm:$0xff pattern:$0x73625140]  ;;  %v719_v13 = vld.sshfl [vmem:[#allocation1 + $0x8] sm:$0xff pattern:$0x73625140] }
  0x34   : > { %833 = vst [vmem:[#allocation1] ss:$4 sm:$0xff] %v1566_v8  ;;  %v720_v23 = vsel %vm555_vm0, %v718_v12, 0  ;;  %v722_v24 = vsel %vm555_vm0, %v719_v13, 0 }
  0x92   : > { %v545_v14 = vpop.permute.xlu0 %544 }
  0x9b   : > { %v593_v30 = vpop.permute.xlu0 %592 }
  0x9c   : > { %v2153_v31 = vperm.slane %v593_v30, 0 }
  0xa5   : > { %v569_v15 = vpop.f32.mrf.mxu0  ;;  %v582_v16 = vpop.f32.mrf.mxu1 }
  0xa6   : > { %v570_v17 = vadd.f32 %v569_v15, %v545_v14  ;;  %v583_v18 = vadd.f32 %v582_v16, %v545_v14  ;;  %v871_v16 = vld [vmem:[%s530_s26] sm:$0xf] }
  0xa8   : > { %v586_v19 = vmax.f32 %v570_v17, 0.0  ;;  %v587_v20 = vmax.f32 %v583_v18, 0.0 }
  0xaa   : > { %v588_v21 = vpack.c.bf16 %v586_v19, %v586_v19  ;;  %v589_v22 = vpack.c.bf16 %v587_v20, %v587_v20 }
  0xac   : > { %v600_v25 = vsel %vm555_vm0, %v588_v21, 0  ;;  %v603_v26 = vsel %vm555_vm0, %v589_v22, 0  ;;  %v870_v21 = vld [vmem:[%s526_s12] sm:$0xff] }
  0xad   : > { %v571_v27 = vpop.f32.mrf.mxu0  ;;  %v584_v28 = vpop.f32.mrf.mxu1  ;;  %612 = vmatpush.bf16.msra.mxu2 %v600_v25  ;;  %625 = vmatpush.bf16.msra.mxu3 %v603_v26 }
  0xb0   : > { %1562 = vmatmul.msk.bf16.vlgmr.msra.gmra.mxu2 %vm551_vm1, %v2145_v29  ;;  %1563 = vmatmul.msk.bf16.vlgmr.msra.gmra.mxu3 %vm551_vm1, %v2145_v29 }
  0xb1   : > { %731 = vmatpush.bf16.msrb.mxu2 %v720_v23  ;;  %744 = vmatpush.bf16.msrb.mxu3 %v722_v24  ;;  %v834_v23 = vld.sshfl [vmem:[#allocation1] sm:$0xff pattern:$0x73625140]  ;;  %v835_v24 = vld.sshfl [vmem:[#allocation1 + $0x8] sm:$0xff pattern:$0x73625140] }
  0xb2   : > { %882 = vst [vmem:[#allocation1] ss:$4 sm:$0xff] %v870_v21  ;;  %v875_v21 = vperm.slane %v871_v16, 2 }
  0xb5   : > { %845 = vmatpush.bf16.xpose.msra.mxu2 %v834_v23  ;;  %858 = vmatpush.bf16.xpose.msra.mxu3 %v835_v24  ;;  %v873_v23 = vperm.slane %v871_v16, 0 }
  0xb9   : > { %v885_v30 = vld.sshfl [vmem:[#allocation1 + $0x10] sm:$0xff pattern:$0x73625140] }
  0xc0   : > { %1567 = vmatmul.msk.bf16.vlgmr.msrb.gmra.mxu2 %vm551_vm1, %v537_v7  ;;  %1568 = vmatmul.msk.bf16.vlgmr.msrb.gmra.mxu3 %vm551_vm1, %v537_v7  ;;  %v675_v7 = vlaneseq }
  0xc2   : > { %vm2162_vm11 = vcmp.lt.s32.totalorder %v675_v7, 256 }
 0x133   : > { %v614_v32 = vpop.f32.mrf.mxu2  ;;  %v627_v33 = vpop.f32.mrf.mxu3 }
 0x134   : > { %v615_v34 = vadd.f32 %v614_v32, %v2153_v31  ;;  %v628_v35 = vadd.f32 %v627_v33, %v2153_v31  ;;  %v886_v32 = vld.sshfl [vmem:[#allocation1 + $0x18] sm:$0xff pattern:$0x73625140] }
 0x136   : > { %v1564_v36 = vmul.f32 -1.442695, %v615_v34  ;;  %v1565_v37 = vmul.f32 -1.442695, %v628_v35  ;;  %v894_v34 = vsel %vm555_vm0, %v885_v30, 0  ;;  %v896_v35 = vsel %vm555_vm0, %v886_v32, 0 }
 0x137   : > { %931 = vmatpush.bf16.msrb.mxu2 %v894_v34  ;;  %944 = vmatpush.bf16.msrb.mxu3 %v896_v35 }
 0x138   : > { %1822 = vpow2.f32 %v1564_v36 }
 0x139   : > { %1824 = vpow2.f32 %v1565_v37 }
 0x13b   : > { %v616_v38 = vpop.f32.mrf.mxu2  ;;  %v629_v39 = vpop.f32.mrf.mxu3 }
 0x13e   : > { %v1823_v40 = vpop.eup %1822 }
 0x13f   : > { %v1825_v41 = vpop.eup %1824  ;;  %v637_v42 = vadd.f32 1.0, %v1823_v40 }
 0x140   : > { %v638_v43 = vadd.f32 1.0, %v1825_v41 }
 0x141   : > { %1826 = vrcp.f32 %v637_v42  ;;  %v650_v61 = vand.u32 2147483648, %v637_v42  ;;  %v648_v0 = vand.u32 2147483647, %v637_v42  ;;  %vm644_vm4 = vweird.f32 %v637_v42 }
 0x142   : > { %1828 = vrcp.f32 %v638_v43  ;;  %v665_v1 = vand.u32 2147483648, %v638_v43  ;;  %v663_v3 = vand.u32 2147483647, %v638_v43  ;;  %vm659_vm6 = vweird.f32 %v638_v43 }
 0x143   : > { %v733_v44 = vpop.f32.mrf.mxu2  ;;  %v746_v45 = vpop.f32.mrf.mxu3  ;;  %v651_v5 = vor.u32 1.1754944e-38, %v650_v61  ;;  %vm649_vm7 = vcmp.eq.f32.partialorder %v648_v0, 8.507059e+37 }
 0x144   : > { %v734_v46 = vadd.f32 %v733_v44, %v545_v14  ;;  %v747_v47 = vadd.f32 %v746_v45, %v545_v14  ;;  %v666_v9 = vor.u32 1.1754944e-38, %v665_v1  ;;  %vm664_vm9 = vcmp.eq.f32.partialorder %v663_v3, 8.507059e+37  ;;  %v884_v3 = vld.sshfl [vmem:[#allocation1 + $0x8] sm:$0xff pattern:$0x73625140] }
 0x146   : > { %v750_v48 = vmax.f32 %v734_v46, 0.0  ;;  %v751_v49 = vmax.f32 %v747_v47, 0.0 }
 0x147   : > { %v1827_v50 = vpop.eup %1826 }
 0x148   : > { %v1829_v51 = vpop.eup %1828  ;;  %v640_v52 = vmul.f32 %v1827_v50, %v637_v42  ;;  %v752_v53 = vpack.c.bf16 %v750_v48, %v750_v48  ;;  %v753_v54 = vpack.c.bf16 %v751_v49, %v751_v49  ;;  %vm645_vm2 = vweird.f32 %v1827_v50 }
 0x149   : > { %v655_v55 = vmul.f32 %v1829_v51, %v638_v43  ;;  %vm660_vm3 = vweird.f32 %v1829_v51  ;;  %vm646_vm5 = vmor %vm644_vm4, %vm645_vm2 }
 0x14a   : > { %v755_v56 = vsel %vm555_vm0, %v752_v53, 0  ;;  %v758_v57 = vsel %vm555_vm0, %v753_v54, 0  ;;  %v641_v58 = vsub.f32 1.0, %v640_v52  ;;  %vm661_vm8 = vmor %vm659_vm6, %vm660_vm3  ;;  %vm960_vm6 = vcmask 1043456  }
 0x14b   : > { %767 = vmatpush.bf16.msra.mxu0 %v755_v56  ;;  %780 = vmatpush.bf16.msra.mxu1 %v758_v57  ;;  %v735_v59 = vpop.f32.mrf.mxu2  ;;  %v748_v60 = vpop.f32.mrf.mxu3  ;;  %v656_v62 = vsub.f32 1.0, %v655_v55 }
 0x14c   : > { %v642_v63 = vmul.f32 %v1827_v50, %v641_v58 }
 0x14d   : > { %v657_v2 = vmul.f32 %v1829_v51, %v656_v62 }
 0x14e   : > { %v643_v4 = vadd.f32 %v1827_v50, %v642_v63 }
 0x14f   : > { %v658_v6 = vadd.f32 %v1829_v51, %v657_v2  ;;  %v883_v2 = vld.sshfl [vmem:[#allocation1] sm:$0xff pattern:$0x73625140] }
 0x150   : > { %v647_v8 = vsel %vm646_vm5, %v1827_v50, %v643_v4  ;;  %v890_v4 = vsel %vm555_vm0, %v883_v2, 0 }
 0x151   : > { %v652_v10 = vsel %vm649_vm7, %v651_v5, %v647_v8  ;;  %v662_v11 = vsel %vm661_vm8, %v1829_v51, %v658_v6  ;;  %v892_v5 = vsel %vm555_vm0, %v884_v3, 0 }
 0x152   : > { %v680_v12 = vpack.c.bf16 %v652_v10, %v652_v10  ;;  %v667_v13 = vsel %vm664_vm9, %v666_v9, %v662_v11 }
 0x153   : > { %v671_v14 = vrot.slane %v667_v13, 7  ;;  %v681_v15 = vpack.c.bf16 %v667_v13, %v667_v13 }
 0x154   : > { %695 = vmatmul.bf16.vlgmr.msrb.gmra.mxu0 %v680_v12 }
 0x155   : > { %708 = vmatmul.bf16.vlgmr.msrb.gmra.mxu1 %v681_v15  ;;  %v673_v17 = vsel %vm672_vm10, %v652_v10, %v671_v14  ;;  %905 = vmatpush.bf16.msrb.mxu0 %v890_v4 }
 0x156   : > { %679 = vst.msk [vmem:[%s2167_s23] ss:$2 sm:$0x3] %vm2162_vm11, %v673_v17  ;;  %918 = vmatpush.bf16.msrb.mxu1 %v892_v5 }
 0x164   : > { %1569 = vmatmul.msk.bf16.vlgmr.msra.gmra.mxu0 %vm551_vm1, %v2145_v29 }
 0x165   : > { %1570 = vmatmul.msk.bf16.vlgmr.msra.gmra.mxu1 %vm551_vm1, %v2145_v29 }
 0x1d1   : > { %v696_v18 = vpop.f32.mrf.mxu0 }
 0x1d2   : > { %v709_v19 = vpop.f32.mrf.mxu1 }
 0x1d3   : > { %v2177_v20 = vadd.f32 %v709_v19, %v696_v18  ;;  %v874_v18 = vperm.slane %v871_v16, 1 }
 0x1d5   : > { %v713_v10 = vmul.f32 0.00390625, %v2177_v20 }
 0x1d9   : > { %v698_v22 = vpop.f32.mrf.mxu0 }
 0x1da   : > { %v711_v25 = vpop.f32.mrf.mxu1  ;;  %v876_v22 = vperm.slane %v871_v16, 3 }
 0x1e1   : > { %v769_v26 = vpop.f32.mrf.mxu0 }
 0x1e2   : > { %v770_v27 = vadd.f32 %v769_v26, %v2153_v31  ;;  %v782_v28 = vpop.f32.mrf.mxu1 }
 0x1e3   : > { %v783_v29 = vadd.f32 %v782_v28, %v2153_v31 }
 0x1e4   : > { %v1571_v33 = vmul.f32 -1.442695, %v770_v27 }
 0x1e5   : > { %v1572_v36 = vmul.f32 -1.442695, %v783_v29 }
 0x1e6   : > { %1830 = vpow2.f32 %v1571_v33 }
 0x1e7   : > { %1832 = vpow2.f32 %v1572_v36 }
 0x1e9   : > { %v771_v37 = vpop.f32.mrf.mxu0 }
 0x1ea   : > { %v784_v38 = vpop.f32.mrf.mxu1 }
 0x1ec   : > { %v1831_v39 = vpop.eup %1830 }
 0x1ed   : > { %v1833_v40 = vpop.eup %1832  ;;  %v792_v41 = vadd.f32 1.0, %v1831_v39 }
 0x1ee   : > { %v793_v42 = vadd.f32 1.0, %v1833_v40 }
 0x1ef   : > { %1834 = vrcp.f32 %v792_v41  ;;  %v805_v48 = vand.u32 2147483648, %v792_v41  ;;  %v803_v50 = vand.u32 2147483647, %v792_v41  ;;  %vm799_vm14 = vweird.f32 %v792_v41 }
 0x1f0   : > { %1836 = vrcp.f32 %v793_v42  ;;  %v820_v51 = vand.u32 2147483648, %v793_v42  ;;  %v818_v53 = vand.u32 2147483647, %v793_v42  ;;  %vm814_vm2 = vweird.f32 %v793_v42 }
 0x1f1   : > { %v806_v55 = vor.u32 1.1754944e-38, %v805_v48  ;;  %vm804_vm3 = vcmp.eq.f32.partialorder %v803_v50, 8.507059e+37 }
 0x1f2   : > { %v821_v58 = vor.u32 1.1754944e-38, %v820_v51  ;;  %vm819_vm5 = vcmp.eq.f32.partialorder %v818_v53, 8.507059e+37 }
 0x1f5   : > { %v1835_v31 = vpop.eup %1834 }
 0x1f6   : > { %v1837_v43 = vpop.eup %1836  ;;  %v795_v44 = vmul.f32 %v1835_v31, %v792_v41  ;;  %vm800_vm12 = vweird.f32 %v1835_v31 }
 0x1f7   : > { %v810_v45 = vmul.f32 %v1837_v43, %v793_v42  ;;  %vm815_vm13 = vweird.f32 %v1837_v43  ;;  %vm801_vm15 = vmor %vm799_vm14, %vm800_vm12 }
 0x1f8   : > { %v796_v46 = vsub.f32 1.0, %v795_v44  ;;  %vm816_vm4 = vmor %vm814_vm2, %vm815_vm13 }
 0x1f9   : > { %v811_v47 = vsub.f32 1.0, %v810_v45 }
 0x1fa   : > { %v797_v49 = vmul.f32 %v1835_v31, %v796_v46 }
 0x1fb   : > { %v812_v52 = vmul.f32 %v1837_v43, %v811_v47 }
 0x1fc   : > { %v798_v54 = vadd.f32 %v1835_v31, %v797_v49 }
 0x1fd   : > { %v813_v56 = vadd.f32 %v1837_v43, %v812_v52 }
 0x1fe   : > { %v802_v57 = vsel %vm801_vm15, %v1835_v31, %v798_v54 }
 0x1ff   : > { %v807_v59 = vsel %vm804_vm3, %v806_v55, %v802_v57  ;;  %v817_v60 = vsel %vm816_vm4, %v1837_v43, %v813_v56 }
 0x200   : > { %v831_v61 = vpack.c.bf16 %v807_v59, %v807_v59  ;;  %v822_v62 = vsel %vm819_vm5, %v821_v58, %v817_v60 }
 0x201   : > { %v826_v63 = vrot.slane %v822_v62, 7  ;;  %v832_v0 = vpack.c.bf16 %v822_v62, %v822_v62 }
 0x202   : > { %846 = vmatmul.bf16.vlgmr.msra.gmra.mxu2 %v831_v61 }
 0x203   : > { %859 = vmatmul.bf16.vlgmr.msra.gmra.mxu3 %v832_v0  ;;  %v827_v1 = vsel %vm672_vm10, %v807_v59, %v826_v63 }
 0x204   : > { %1573 = vst.msk [vmem:[%s2167_s23 + $0x1] ss:$2 sm:$0x3] %vm2162_vm11, %v827_v1 }
 0x285   : > { %v847_v6 = vpop.f32.mrf.mxu2 }
 0x286   : > { %v860_v7 = vpop.f32.mrf.mxu3 }
 0x287   : > { %v861_v8 = vadd.f32 %v860_v7, %v847_v6 }
 0x289   : > { %v864_v9 = vmul.f32 0.00390625, %v861_v8 }
 0x28b   : > { %v866_v11 = vrot.slane %v864_v9, 7 }
 0x28d   : > { %v868_v12 = vsel %vm672_vm10, %v713_v10, %v866_v11  ;;  %v849_v13 = vpop.f32.mrf.mxu2 }
 0x28e   : > { %v869_v14 = vpack.c.bf16 %v868_v12, %v868_v12  ;;  %v862_v15 = vpop.f32.mrf.mxu3 }
 0x290   : > { %1574 = vmatmul.msk.bf16.vlgmr.msrb.gmra.mxu0 %vm551_vm1, %v869_v14  ;;  %1575 = vmatmul.msk.bf16.vlgmr.msrb.gmra.mxu1 %vm551_vm1, %v869_v14 }
 0x291   : > { %1576 = vmatmul.msk.bf16.vlgmr.msrb.gmra.mxu2 %vm551_vm1, %v869_v14  ;;  %1577 = vmatmul.msk.bf16.vlgmr.msrb.gmra.mxu3 %vm551_vm1, %v869_v14  ;;  %vm958_vm1 = vcmask 1045508  }
 0x30d   : > { %v907_v17 = vpop.f32.mrf.mxu0  ;;  %v920_v19 = vpop.f32.mrf.mxu1 }
 0x30e   : > { %v2203_v20 = vadd.f32 %v920_v19, %v874_v18  ;;  %v2214_v32 = vadd.f32 %v907_v17, %v873_v23 }
 0x310   : > { %v954_v26 = vrot.slane %v2203_v20, 6 }
 0x312   : > { %v957_v35 = vsel %vm555_vm0, %v2214_v32, %v954_v26 }
 0x314   : > { %v933_v24 = vpop.f32.mrf.mxu2  ;;  %v946_v25 = vpop.f32.mrf.mxu3 }
 0x315   : > { %v2206_v27 = vadd.f32 %v933_v24, %v875_v21  ;;  %v2212_v28 = vadd.f32 %v946_v25, %v876_v22  ;;  %v909_v29 = vpop.f32.mrf.mxu0  ;;  %v922_v30 = vpop.f32.mrf.mxu1 }
 0x317   : > { %v955_v33 = vrot.slane %v2206_v27, 4  ;;  %v956_v34 = vrot.slane %v2212_v28, 2 }
 0x318   : > { %967 = sbr.rel (%p1578_p12) target bundleno = 799 (0x31f), region = 60 }
 0x319   : > { %v959_v36 = vsel %vm958_vm1, %v955_v33, %v956_v34 }
 0x31a   : > { %v961_v37 = vsel %vm960_vm6, %v957_v35, %v959_v36 }
 0x31b   : > { %963 = vst [vmem:[%s493_s14] sm:$0xff] %v961_v37 }
 0x31c   : > { %v935_v38 = vpop.f32.mrf.mxu2  ;;  %v948_v39 = vpop.f32.mrf.mxu3 }
 0x31d   : > { %v1838_v40 = vld [vmem:[%s2347_s8] ss:$0 sm:$0xff]  ;;  %vm972_vm7 = vcmask 9216  }
 0x31e   : > { %973 = vst.msk [vmem:[#allocation2] sm:$0x3] %vm972_vm7, %v1838_v40 }
 0x31f PF: > { %v1726_v41 = vld [vmem:[%s2119_s25 + $0x38] sm:$0xff]  ;;  %v1725_v44 = vld [vmem:[%s2119_s25 + $0x30] sm:$0xff]  ;;  %v1724_v48 = vld [vmem:[%s2119_s25 + $0x28] sm:$0xff]  ;;  %v975_v8 = vpack.c.bf16 %v2214_v32, %v2214_v32  ;;  %v976_v9 = vpack.c.bf16 %v2203_v20, %v2203_v20  ;;  %v977_v10 = vpack.c.bf16 %v2206_v27, %v2206_v27  ;;  %v978_v11 = vpack.c.bf16 %v2212_v28, %v2212_v28  ;;  %s2369_s12 = sadd.s32 4294967295, %s1977_s22   ;;  %s1325_s17 = sshll.u32 %s493_s14, 4  ;;  %s1326_s17 = int_to_ptr.vmem [resolvable:$true] %s1325_s17 }
 0x320   : > { %v1734_v42 = vld [vmem:[%s2119_s25 + $0x78] sm:$0xff]  ;;  %1235 = vmatpush.bf16.msra.mxu0 %v1726_v41  ;;  %v1733_v45 = vld [vmem:[%s2119_s25 + $0x70] sm:$0xff]  ;;  %v1732_v49 = vld [vmem:[%s2119_s25 + $0x68] sm:$0xff]  ;;  %s2273_s19 = sand.u32 1, %s2369_s12   ;;  %s1752_s29 = sshll.u32 %s1969_s20, 2 }
 0x321   : > { %v1742_v31 = vld [vmem:[%s2119_s25 + $0xb8] sm:$0xff]  ;;  %1248 = vmatpush.bf16.msra.mxu1 %v1734_v42  ;;  %v1741_v46 = vld [vmem:[%s2119_s25 + $0xb0] sm:$0xff]  ;;  %v1740_v50 = vld [vmem:[%s2119_s25 + $0xa8] sm:$0xff]  ;;  %s1291_s13 = scalar_lea.sflag [#allocation5], %s2273_s19  ;;  %s1859_s16 = scalar_lea.hbm %s2349_s10, 16 }
 0x322   : > { %v1750_v43 = vld [vmem:[%s2119_s25 + $0xf8] sm:$0xff]  ;;  %1261 = vmatpush.bf16.msra.mxu2 %v1742_v31  ;;  %v1749_v47 = vld [vmem:[%s2119_s25 + $0xf0] sm:$0xff]  ;;  %v1748_v51 = vld [vmem:[%s2119_s25 + $0xe8] sm:$0xff] }
 0x323   : > { %1274 = vmatpush.bf16.msra.mxu3 %v1750_v43  ;;  %v1723_v52 = vld [vmem:[%s2119_s25 + $0x20] sm:$0xff]  ;;  %v1722_v56 = vld [vmem:[%s2119_s25 + $0x18] sm:$0xff]  ;;  %v1721_v60 = vld [vmem:[%s2119_s25 + $0x10] sm:$0xff] }
 0x324   : > { %1236 = vmatpush.bf16.msra.mxu0 %v1725_v44  ;;  %v1731_v53 = vld [vmem:[%s2119_s25 + $0x60] sm:$0xff]  ;;  %v1730_v57 = vld [vmem:[%s2119_s25 + $0x58] sm:$0xff]  ;;  %v1729_v61 = vld [vmem:[%s2119_s25 + $0x50] sm:$0xff] }
 0x325   : > { %1249 = vmatpush.bf16.msra.mxu1 %v1733_v45  ;;  %v1739_v54 = vld [vmem:[%s2119_s25 + $0xa0] sm:$0xff]  ;;  %v1738_v58 = vld [vmem:[%s2119_s25 + $0x98] sm:$0xff]  ;;  %v1737_v62 = vld [vmem:[%s2119_s25 + $0x90] sm:$0xff] }
 0x326   : > { %1262 = vmatpush.bf16.msra.mxu2 %v1741_v46  ;;  %v1747_v55 = vld [vmem:[%s2119_s25 + $0xe0] sm:$0xff]  ;;  %v1746_v59 = vld [vmem:[%s2119_s25 + $0xd8] sm:$0xff]  ;;  %v1745_v63 = vld [vmem:[%s2119_s25 + $0xd0] sm:$0xff] }
 0x327   : > { %1275 = vmatpush.bf16.msra.mxu3 %v1749_v47  ;;  %v1720_v0 = vld [vmem:[%s2119_s25 + $0x8] sm:$0xff]  ;;  %v1719_v4 = vld [vmem:[%s2119_s25] sm:$0xff] }
 0x328   : > { %1237 = vmatpush.bf16.msra.mxu0 %v1724_v48  ;;  %v1728_v1 = vld [vmem:[%s2119_s25 + $0x48] sm:$0xff]  ;;  %v1727_v5 = vld [vmem:[%s2119_s25 + $0x40] sm:$0xff] }
 0x329   : > { %1250 = vmatpush.bf16.msra.mxu1 %v1732_v49  ;;  %v1736_v2 = vld [vmem:[%s2119_s25 + $0x88] sm:$0xff]  ;;  %v1735_v6 = vld [vmem:[%s2119_s25 + $0x80] sm:$0xff] }
 0x32a   : > { %1263 = vmatpush.bf16.msra.mxu2 %v1740_v50  ;;  %v1744_v3 = vld [vmem:[%s2119_s25 + $0xc8] sm:$0xff]  ;;  %v1743_v7 = vld [vmem:[%s2119_s25 + $0xc0] sm:$0xff]  ;;  %s1751_s25 = sshll.u32 %s1969_s20, 3 }
 0x32b   : > { %1276 = vmatpush.bf16.msra.mxu3 %v1748_v51  ;;  %s1323_s21 = scalar_lea.hbm %s2349_s10, %s1751_s25 }
 0x32c   : > { %1238 = vmatpush.bf16.msra.mxu0 %v1723_v52  ;;  %s1327_s26 = sshll.u32 %s1323_s21, 4  ;;  %s1328_s26 = int_to_ptr.hbm [resolvable:$true] %s1327_s26 }
 0x32d   : > { %1251 = vmatpush.bf16.msra.mxu1 %v1731_v53  ;;  %s1853_s0 = sshra.s32 %s1328_s26, 4  ;;  %s1854_s0 = int_to_ptr.hbm [resolvable:$true] %s1853_s0 }
 0x32e   : > { %1264 = vmatpush.bf16.msra.mxu2 %v1739_v54  ;;  %s1855_s1 = scalar_lea.hbm %s1854_s0, 8  ;;  %p1860_p3 = scmp.lt.s32.totalorder %s1854_s0, %s2349_s10 }
 0x32f   : > { %1277 = vmatpush.bf16.msra.mxu3 %v1747_v55  ;;  %p1856_p13 = scmp.ne.s32.totalorder %s1854_s0, %s1855_s1  ;;  %p1861_p5 = scmp.lt.s32.totalorder %s1859_s16, %s1855_s1 }
 0x330   : > { %1239 = vmatpush.bf16.msra.mxu0 %v1722_v56 }
 0x331   : > { %1252 = vmatpush.bf16.msra.mxu1 %v1730_v57  ;;  %p1857_p0 = pnand %p1856_p13, %p2086_p4  ;;  %p1862_p6 = por %p1861_p5, %p1860_p3 }
 0x332   : > { %1265 = vmatpush.bf16.msra.mxu2 %v1738_v58 }
 0x333   : > { %1278 = vmatpush.bf16.msra.mxu3 %v1746_v59  ;;  %p1858_p1 = pneg %p1857_p0 }
 0x334   : > { %1240 = vmatpush.bf16.msra.mxu0 %v1721_v60 }
 0x335   : > { %1253 = vmatpush.bf16.msra.mxu1 %v1729_v61  ;;  %p1863_p7 = pnand %p1862_p6, %p1858_p1 }
 0x336   : > { %1266 = vmatpush.bf16.msra.mxu2 %v1737_v62 }
 0x337   : > { %1279 = vmatpush.bf16.msra.mxu3 %v1745_v63 }
 0x338   : > { %1241 = vmatpush.bf16.msra.mxu0 %v1720_v0 }
 0x339   : > { %1254 = vmatpush.bf16.msra.mxu1 %v1728_v1 }
 0x33a   : > { %1267 = vmatpush.bf16.msra.mxu2 %v1736_v2 }
 0x33b   : > { %1280 = vmatpush.bf16.msra.mxu3 %v1744_v3 }
 0x33c   : > { %1242 = vmatpush.bf16.msra.mxu0 %v1719_v4 }
 0x33d   : > { %1255 = vmatpush.bf16.msra.mxu1 %v1727_v5 }
 0x33e   : > { %1268 = vmatpush.bf16.msra.mxu2 %v1735_v6 }
 0x33f   : > { %1281 = vmatpush.bf16.msra.mxu3 %v1743_v7  ;;  %1243 = vmatmul.bf16.vlgmr.msra.gmra.mxu0 %v975_v8 }
 0x340   : > { %1256 = vmatmul.bf16.vlgmr.msra.gmra.mxu1 %v976_v9 }
 0x341   : > { %1269 = vmatmul.bf16.vlgmr.msra.gmra.mxu2 %v977_v10 }
 0x342   : > { %1282 = vmatmul.bf16.vlgmr.msra.gmra.mxu3 %v978_v11 }
 0x343   : > { %1866 = shalt.err (!%p1863_p7)
}
 0x344   : > { %1755 = dma.vmem_to_hbm [thread:$0]  (%p2086_p4), %s1326_s17, 128, %s1328_s26, %s1291_s13  }
 0x345   : > { %s1340_s21 = scalar_lea.hbm %s2350_s11, %s1752_s29  ;;  %s1342_s24 = sshll.u32 %s2167_s23, 4  ;;  %s1343_s24 = int_to_ptr.vmem [resolvable:$true] %s1342_s24 }
 0x346   : > { %s1344_s25 = sshll.u32 %s1340_s21, 4  ;;  %s1887_s15 = scalar_lea.hbm %s2350_s11, 8  ;;  %s1345_s25 = int_to_ptr.hbm [resolvable:$true] %s1344_s25 }
 0x347   : > { %s1881_s0 = sshra.s32 %s1345_s25, 4  ;;  %s1882_s0 = int_to_ptr.hbm [resolvable:$true] %s1881_s0 }
 0x348   : > { %s1883_s1 = scalar_lea.hbm %s1882_s0, 4  ;;  %p1888_p12 = scmp.lt.s32.totalorder %s1882_s0, %s2350_s11 }
 0x349   : > { %p1884_p9 = scmp.ne.s32.totalorder %s1882_s0, %s1883_s1  ;;  %p1889_p13 = scmp.lt.s32.totalorder %s1887_s15, %s1883_s1 }
 0x34b   : > { %p1885_p10 = pnand %p1884_p9, %p2086_p4  ;;  %p1890_p0 = por %p1889_p13, %p1888_p12 }
 0x34d   : > { %p1886_p11 = pneg %p1885_p10 }
 0x34f   : > { %p1891_p1 = pnand %p1890_p0, %p1886_p11 }
 0x351   : > { %1894 = shalt.err (!%p1891_p1)
}
 0x352   : > { %1756 = dma.vmem_to_hbm [thread:$0]  (%p2086_p4), %s1343_s24, 64, %s1345_s25, %s1291_s13   ;;  %v974_v20 = vld [vmem:[#allocation2] sm:$0x3]  ;;  %vm1288_vm0 = vcmask 9216  }
 0x353   : > { %s1980_s23 = smov [#allocation2]   ;;  %s1310_s28 = sshll.u32 %s2348_s9, 4  ;;  %s1311_s28 = int_to_ptr.hbm [resolvable:$true] %s1310_s28 }
 0x354   : > { %s1308_s29 = sshll.u32 %s1980_s23, 4  ;;  %s1309_s29 = int_to_ptr.vmem [resolvable:$true] %s1308_s29 }
 0x3bc   : > { %v1244_v12 = vpop.f32.mrf.mxu0 }
 0x3bd   : > { %v1257_v13 = vpop.f32.mrf.mxu1 }
 0x3be   : > { %v1258_v14 = vadd.f32 %v1257_v13, %v1244_v12 }
 0x3c4   : > { %v1270_v15 = vpop.f32.mrf.mxu2  ;;  %v1246_v18 = vpop.f32.mrf.mxu0 }
 0x3c5   : > { %v1283_v16 = vpop.f32.mrf.mxu3  ;;  %v1271_v17 = vadd.f32 %v1270_v15, %v1258_v14  ;;  %v1259_v19 = vpop.f32.mrf.mxu1 }
 0x3c7   : > { %v1284_v21 = vadd.f32 %v1283_v16, %v1271_v17 }
 0x3c9   : > { %v1287_v22 = vadd.f32 %v1284_v21, %v974_v20 }
 0x3cb   : > { %1289 = vst.msk [vmem:[#allocation2] sm:$0x3] %vm1288_vm0, %v1287_v22 }
 0x3cc   : > { %v1272_v23 = vpop.f32.mrf.mxu2  ;;  %1754 = dma.vmem_to_hbm [thread:$0]  (%p2077_p2), %s1309_s29, 32, %s1311_s28, [#allocation3]  }
 0x3cd   : > { %v1285_v24 = vpop.f32.mrf.mxu3 }
 0x3ce   : > { %1948 = dma.done.wait (%p2077_p2), [#allocation3], 32  }
 0x3cf   : > { %1950 = vsyncadd (%p2077_p2), [#allocation3], 4294967264 }
 0x3d0 PF: > { %p1770_p4 = scmp.ge.s32.totalorder %s1977_s22, 2  ;;  %s2370_s19 = sadd.s32 4294967294, %s1977_s22  }
 0x3d1   : > { %s1361_s13 = sand.u32 1, %s2370_s19  }
 0x3d2   : > { %p1762_p3 = pnand %p1770_p4, %p2095_p8  ;;  %s1362_s21 = scalar_lea.sflag [#allocation5], %s1361_s13 }
 0x3d4   : > { %p1763_p5 = pneg %p1762_p3 }
 0x3d6   : > { %1952 = dma.done.wait (%p1763_p5), %s1362_s21, 192  }
 0x3d7   : > { %1954 = vsyncadd (%p1763_p5), %s1362_s21, 4294967104  ;;  %s26_s22 = sadd.s32 1, %s1977_s22   ;;  %s2371_s24 = sld [smem:[#allocation9_spill]] }
 0x3d8   : > { %p23_p6 = scmp.ge.s32.totalorder %s26_s22, 4   ;;  %s2372_s19 = sld [smem:[#allocation12_spill]] }
 0x3d9   : > { %s2373_s20 = sld [smem:[#allocation10_spill]]  ;;  %s2375_s17 = smov %s1961_s18 }
 0x3da   : > { %s2374_s21 = sld [smem:[#allocation11_spill]]  ;;  %25 = sbr.rel (!%p23_p6) target bundleno = 8 (0x8), region = 143 }
 0x3dd   : > { %s2376_s18 = smov %s2371_s24 }
 0x3df   :  { %1378 = vsyncpa [#allocation3], 1 }
 0x3e0   :  { %1380 = vsyncpa [#allocation3 + $0x1], 1 }
 0x3e1   :  { %1381 = vsyncpa [#allocation5], 1 }
 0x3e2   :  { %1383 = vsyncpa [#allocation5 + $0x1], 1 }

</bundles_post_ra>
